<compile_context>
chip_gen: v7x
topology: tpu7x:2x2x1
jax: 0.10.0
libtpu: 0.0.40
codegen_flags: <defaults>
</compile_context>

<pallas_src>
import functools

import jax
import jax.numpy as jnp
from jax.experimental import pallas as pl
from jax.experimental.pallas import tpu as pltpu


# Tap order shared by weight packing, mask construction and the kernel:
# t = (dy + 1) * 3 + (dx + 1), matching cross-correlation (PyTorch Conv2d)
# kernel indexing.
_TAPS = tuple((dy, dx) for dy in (-1, 0, 1) for dx in (-1, 0, 1))


def boundary_refine_kernel(x_ref, w1_ref, s1_ref, b1_ref,
                           w2_ref, s2_ref, b2_ref, m_ref,
                           o_ref, p_ref, *, width):
    """One grid step: `nb` images, layout (C, H*W) with H*W on lanes.

    x_ref : (nb, C, HW) f32   input block
    w*_ref: (C, 9*C)    bf16  packed conv weights (tap-major columns)
    s*/b* : (C, 1)      f32   folded BN scale / bias
    m_ref : (9, 1, HW)  f32   0/1 tap validity masks (unshifted)
    o_ref : (nb, C, HW) f32   output block
    p_ref : (9*C, HW)   bf16  im2col scratch (reused for both convs)
    """
    nb, C, HW = x_ref.shape

    # Hoist per-step invariants (weights, folded BN affines, tap masks).
    w1 = w1_ref[...]
    w2 = w2_ref[...]
    s1 = s1_ref[...]
    b1 = b1_ref[...]
    s2 = s2_ref[...]
    b2 = b2_ref[...]
    masks = [m_ref[t] for t in range(9)]            # each (1, HW) f32

    def im2col_into_scratch(v_f32):
        # p_ref[t*C:(t+1)*C, p] = v[:, p + dy*W + dx] for valid p, else 0.
        # Roll the whole (C, HW) slab along lanes (XLU rotate, static shift),
        # then zero the positions whose neighbour falls outside the image.
        for t, (dy, dx) in enumerate(_TAPS):
            off = dy * width + dx
            if off == 0:
                tap = v_f32                         # center tap: no shift/mask
            else:
                tap = pltpu.roll(v_f32, shift=(-off) % HW, axis=1) * masks[t]
            p_ref[t * C:(t + 1) * C, :] = tap.astype(jnp.bfloat16)

    for n in range(nb):                             # static unroll over images
        x = x_ref[n]                                # (C, HW) f32

        # conv1 (3x3, SAME) as ONE matmul over the im2col, + BN1 + ReLU.
        im2col_into_scratch(x)
        a1 = jnp.dot(w1, p_ref[...], preferred_element_type=jnp.float32)
        y = jnp.maximum(a1 * s1 + b1, 0.0)          # (C, HW) f32

        # conv2 (3x3, SAME) + BN2, then the residual add.
        im2col_into_scratch(y)
        a2 = jnp.dot(w2, p_ref[...], preferred_element_type=jnp.float32)
        o_ref[n] = x + a2 * s2 + b2


def _fold_bn(conv_bias, gamma, beta, mean, var, eps):
    scale = gamma / jnp.sqrt(var + eps)
    bias = (conv_bias - mean) * scale + beta
    return (scale.reshape(-1, 1).astype(jnp.float32),
            bias.reshape(-1, 1).astype(jnp.float32))


def _pack_conv_weight(w_hwio):
    # (3, 3, Cin, Cout) HWIO -> (Cout, 9*Cin) bf16, column index t*Cin + ci
    # with t = ky*3 + kx, matching the im2col row order in the kernel.
    kh, kw, cin, cout = w_hwio.shape
    wm = jnp.transpose(w_hwio, (3, 0, 1, 2)).reshape(cout, kh * kw * cin)
    return wm.astype(jnp.bfloat16)


def _tap_masks(h, w):
    # masks[t, 0, p] = 1 iff output position p may read tap t (neighbour
    # p + dy*W + dx lies inside the image).  Applied AFTER the lane roll.
    hw = h * w
    rows = jnp.arange(h)
    cols = jnp.arange(w)
    out = []
    for dy, dx in _TAPS:
        valid = ((rows + dy >= 0) & (rows + dy < h))[:, None] & \
                ((cols + dx >= 0) & (cols + dx < w))[None, :]
        out.append(valid.reshape(1, hw))
    return jnp.stack(out, axis=0).astype(jnp.float32)       # (9, 1, HW)


def _pick_images_per_block(n, c, hw, budget_bytes=16 << 20, max_unroll=8):
    # Fold as many images into one grid step as comfortably fits VMEM while
    # keeping at least two steps for megacore / 2-TC sharding.
    per_img = 2 * 2 * c * hw * 4 + 9 * c * hw * 2
    cap = int(max(1, min(max_unroll, budget_bytes // max(per_img, 1))))
    divisors = [d for d in range(1, n + 1) if n % d == 0 and d <= cap]
    multi = [d for d in divisors if n // d >= 2]
    return max(multi) if multi else max(divisors)


def boundary_refine(x_nchw, w1_hwio, cb1, g1, be1, m1, v1,
                    w2_hwio, cb2, g2, be2, m2, v2,
                    eps=1e-5, images_per_block=None):
    """BoundaryRefine forward.  x_nchw: (N, C, H, W) f32, conv weights in HWIO
    (3, 3, C, C), conv biases cb* (C,), BN params (C,).  Returns (N, C, H, W)."""
    n, c, h, w = x_nchw.shape
    hw = h * w
    x = x_nchw.reshape(n, c, hw).astype(jnp.float32)     # free view, stays NCHW

    w1m = _pack_conv_weight(w1_hwio)
    w2m = _pack_conv_weight(w2_hwio)
    s1, b1 = _fold_bn(cb1, g1, be1, m1, v1, eps)
    s2, b2 = _fold_bn(cb2, g2, be2, m2, v2, eps)
    masks = _tap_masks(h, w)

    nb = images_per_block or _pick_images_per_block(n, c, hw)
    assert n % nb == 0, "images_per_block must divide the batch"
    grid = (n // nb,)

    kernel = functools.partial(boundary_refine_kernel, width=w)

    out = pl.pallas_call(
        kernel,
        out_shape=jax.ShapeDtypeStruct((n, c, hw), jnp.float32),
        grid_spec=pltpu.PrefetchScalarGridSpec(
            num_scalar_prefetch=0,
            grid=grid,
            in_specs=[
                pl.BlockSpec((nb, c, hw), lambda i: (i, 0, 0)),   # x
                pl.BlockSpec((c, 9 * c), lambda i: (0, 0)),       # w1 packed
                pl.BlockSpec((c, 1), lambda i: (0, 0)),           # s1
                pl.BlockSpec((c, 1), lambda i: (0, 0)),           # b1
                pl.BlockSpec((c, 9 * c), lambda i: (0, 0)),       # w2 packed
                pl.BlockSpec((c, 1), lambda i: (0, 0)),           # s2
                pl.BlockSpec((c, 1), lambda i: (0, 0)),           # b2
                pl.BlockSpec((9, 1, hw), lambda i: (0, 0, 0)),    # tap masks
            ],
            out_specs=pl.BlockSpec((nb, c, hw), lambda i: (i, 0, 0)),
            scratch_shapes=[pltpu.VMEM((9 * c, hw), jnp.bfloat16)],
        ),
        compiler_params=pltpu.CompilerParams(
            dimension_semantics=("parallel",),
            vmem_limit_bytes=32 * 1024 * 1024,
        ),
    )(x, w1m, s1, b1, w2m, s2, b2, masks)

    # TODO(synk): for very large feature maps (e.g. 512x512 on v7x's 64 MiB
    # VMEM) tile H into row bands with a 1-row halo instead of whole images.
    return out.reshape(n, c, h, w)


def reference_nchw(x_nchw, w1, cb1, g1, be1, m1, v1,
                   w2, cb2, g2, be2, m2, v2, eps=1e-5):
    """Pure-JAX reference with the same numerics as the kernel: conv operands
    rounded to bf16 (MXU-native), accumulation / BN / ReLU / residual in f32."""
    def bf(a):
        return a.astype(jnp.bfloat16).astype(jnp.float32)
    x = jnp.transpose(x_nchw, (0, 2, 3, 1))
    dn = ('NHWC', 'HWIO', 'NHWC')
    hi = jax.lax.Precision.HIGHEST
    z = jax.lax.conv_general_dilated(bf(x), bf(w1), (1, 1), 'SAME',
                                     dimension_numbers=dn, precision=hi) + cb1
    z = (z - m1) / jnp.sqrt(v1 + eps) * g1 + be1
    z = jnp.maximum(z, 0.0)
    z = jax.lax.conv_general_dilated(bf(z), bf(w2), (1, 1), 'SAME',
                                     dimension_numbers=dn, precision=hi) + cb2
    z = (z - m2) / jnp.sqrt(v2 + eps) * g2 + be2
    return jnp.transpose(x + z, (0, 3, 1, 2))


if __name__ == "__main__":
    N, C, H, W = 2, 4, 16, 16
    key = jax.random.PRNGKey(0)
    keys = jax.random.split(key, 13)

    x = jax.random.normal(keys[0], (N, C, H, W), jnp.float32)

    # Conv weights in HWIO (3, 3, Cin, Cout) + conv biases.
    w1 = 0.1 * jax.random.normal(keys[1], (3, 3, C, C), jnp.float32)
    cb1 = 0.1 * jax.random.normal(keys[2], (C,), jnp.float32)
    w2 = 0.1 * jax.random.normal(keys[3], (3, 3, C, C), jnp.float32)
    cb2 = 0.1 * jax.random.normal(keys[4], (C,), jnp.float32)

    # BatchNorm parameters (eval mode: running stats + affine).
    g1 = 1.0 + 0.1 * jax.random.normal(keys[5], (C,), jnp.float32)
    be1 = 0.1 * jax.random.normal(keys[6], (C,), jnp.float32)
    m1 = 0.1 * jax.random.normal(keys[7], (C,), jnp.float32)
    v1 = jax.random.uniform(keys[8], (C,), jnp.float32, 0.5, 1.5)
    g2 = 1.0 + 0.1 * jax.random.normal(keys[9], (C,), jnp.float32)
    be2 = 0.1 * jax.random.normal(keys[10], (C,), jnp.float32)
    m2 = 0.1 * jax.random.normal(keys[11], (C,), jnp.float32)
    v2 = jax.random.uniform(keys[12], (C,), jnp.float32, 0.5, 1.5)

    out = boundary_refine(x, w1, cb1, g1, be1, m1, v1,
                          w2, cb2, g2, be2, m2, v2)
    out = jax.block_until_ready(out)

    ref = reference_nchw(x, w1, cb1, g1, be1, m1, v1,
                         w2, cb2, g2, be2, m2, v2)
    assert out.shape == (N, C, H, W)
    err = jnp.max(jnp.abs(out - ref))
    assert jnp.allclose(out, ref, atol=2e-2, rtol=2e-2), f"max abs err {err}"

    print("KERNEL_OK")
</pallas_src>

<mosaic_0001>
module attributes {stable_mosaic.version = 11 : i64} {
  func.func @boundary_refine_kernel(%arg0: i32, %arg1: memref<1x4x256xf32, #tpu.memory_space<vmem>>, %arg2: memref<4x36xbf16, #tpu.memory_space<vmem>>, %arg3: memref<4x1xf32, #tpu.memory_space<vmem>>, %arg4: memref<4x1xf32, #tpu.memory_space<vmem>>, %arg5: memref<4x36xbf16, #tpu.memory_space<vmem>>, %arg6: memref<4x1xf32, #tpu.memory_space<vmem>>, %arg7: memref<4x1xf32, #tpu.memory_space<vmem>>, %arg8: memref<9x1x256xf32, #tpu.memory_space<vmem>>, %arg9: memref<1x4x256xf32, #tpu.memory_space<vmem>>, %arg10: memref<36x256xbf16, #tpu.memory_space<vmem>>) attributes {dimension_semantics = [#tpu.dimension_semantics<parallel>], iteration_bounds = array<i64: 2>, scalar_prefetch = 0 : i64, scratch_operands = 1 : i64, tpu.core_type = #tpu.core_type<tc>, window_params = [{transform_indices = @transform_0, window_bounds = array<i64: 1, 4, 256>}, {pipeline_mode = #tpu.pipeline_mode<synchronous>, transform_indices = @transform_1, window_bounds = array<i64: 4, 36>}, {pipeline_mode = #tpu.pipeline_mode<synchronous>, transform_indices = @transform_2, window_bounds = array<i64: 4, 1>}, {pipeline_mode = #tpu.pipeline_mode<synchronous>, transform_indices = @transform_3, window_bounds = array<i64: 4, 1>}, {pipeline_mode = #tpu.pipeline_mode<synchronous>, transform_indices = @transform_4, window_bounds = array<i64: 4, 36>}, {pipeline_mode = #tpu.pipeline_mode<synchronous>, transform_indices = @transform_5, window_bounds = array<i64: 4, 1>}, {pipeline_mode = #tpu.pipeline_mode<synchronous>, transform_indices = @transform_6, window_bounds = array<i64: 4, 1>}, {pipeline_mode = #tpu.pipeline_mode<synchronous>, transform_indices = @transform_7, window_bounds = array<i64: 9, 1, 256>}, {transform_indices = @transform_8, window_bounds = array<i64: 1, 4, 256>}]} {
    %c0 = arith.constant 0 : index
    %c0_0 = arith.constant 0 : index
    %0 = vector.load %arg2[%c0, %c0_0] : memref<4x36xbf16, #tpu.memory_space<vmem>>, vector<4x36xbf16>
    %c0_1 = arith.constant 0 : index
    %c0_2 = arith.constant 0 : index
    %1 = vector.load %arg5[%c0_1, %c0_2] : memref<4x36xbf16, #tpu.memory_space<vmem>>, vector<4x36xbf16>
    %c0_3 = arith.constant 0 : index
    %c0_4 = arith.constant 0 : index
    %2 = vector.load %arg3[%c0_3, %c0_4] : memref<4x1xf32, #tpu.memory_space<vmem>>, vector<4x1xf32>
    %c0_5 = arith.constant 0 : index
    %c0_6 = arith.constant 0 : index
    %3 = vector.load %arg4[%c0_5, %c0_6] : memref<4x1xf32, #tpu.memory_space<vmem>>, vector<4x1xf32>
    %c0_7 = arith.constant 0 : index
    %c0_8 = arith.constant 0 : index
    %4 = vector.load %arg6[%c0_7, %c0_8] : memref<4x1xf32, #tpu.memory_space<vmem>>, vector<4x1xf32>
    %c0_9 = arith.constant 0 : index
    %c0_10 = arith.constant 0 : index
    %5 = vector.load %arg7[%c0_9, %c0_10] : memref<4x1xf32, #tpu.memory_space<vmem>>, vector<4x1xf32>
    %c0_11 = arith.constant 0 : index
    %c0_12 = arith.constant 0 : index
    %c0_13 = arith.constant 0 : index
    %6 = vector.load %arg8[%c0_11, %c0_12, %c0_13] : memref<9x1x256xf32, #tpu.memory_space<vmem>>, vector<1x1x256xf32>
    %7 = vector.shape_cast %6 : vector<1x1x256xf32> to vector<1x256xf32>
    %c1 = arith.constant 1 : index
    %c0_14 = arith.constant 0 : index
    %c0_15 = arith.constant 0 : index
    %8 = vector.load %arg8[%c1, %c0_14, %c0_15] : memref<9x1x256xf32, #tpu.memory_space<vmem>>, vector<1x1x256xf32>
    %9 = vector.shape_cast %8 : vector<1x1x256xf32> to vector<1x256xf32>
    %c2 = arith.constant 2 : index
    %c0_16 = arith.constant 0 : index
    %c0_17 = arith.constant 0 : index
    %10 = vector.load %arg8[%c2, %c0_16, %c0_17] : memref<9x1x256xf32, #tpu.memory_space<vmem>>, vector<1x1x256xf32>
    %11 = vector.shape_cast %10 : vector<1x1x256xf32> to vector<1x256xf32>
    %c3 = arith.constant 3 : index
    %c0_18 = arith.constant 0 : index
    %c0_19 = arith.constant 0 : index
    %12 = vector.load %arg8[%c3, %c0_18, %c0_19] : memref<9x1x256xf32, #tpu.memory_space<vmem>>, vector<1x1x256xf32>
    %13 = vector.shape_cast %12 : vector<1x1x256xf32> to vector<1x256xf32>
    %c5 = arith.constant 5 : index
    %c0_20 = arith.constant 0 : index
    %c0_21 = arith.constant 0 : index
    %14 = vector.load %arg8[%c5, %c0_20, %c0_21] : memref<9x1x256xf32, #tpu.memory_space<vmem>>, vector<1x1x256xf32>
    %15 = vector.shape_cast %14 : vector<1x1x256xf32> to vector<1x256xf32>
    %c6 = arith.constant 6 : index
    %c0_22 = arith.constant 0 : index
    %c0_23 = arith.constant 0 : index
    %16 = vector.load %arg8[%c6, %c0_22, %c0_23] : memref<9x1x256xf32, #tpu.memory_space<vmem>>, vector<1x1x256xf32>
    %17 = vector.shape_cast %16 : vector<1x1x256xf32> to vector<1x256xf32>
    %c7 = arith.constant 7 : index
    %c0_24 = arith.constant 0 : index
    %c0_25 = arith.constant 0 : index
    %18 = vector.load %arg8[%c7, %c0_24, %c0_25] : memref<9x1x256xf32, #tpu.memory_space<vmem>>, vector<1x1x256xf32>
    %19 = vector.shape_cast %18 : vector<1x1x256xf32> to vector<1x256xf32>
    %c8 = arith.constant 8 : index
    %c0_26 = arith.constant 0 : index
    %c0_27 = arith.constant 0 : index
    %20 = vector.load %arg8[%c8, %c0_26, %c0_27] : memref<9x1x256xf32, #tpu.memory_space<vmem>>, vector<1x1x256xf32>
    %21 = vector.shape_cast %20 : vector<1x1x256xf32> to vector<1x256xf32>
    %c0_28 = arith.constant 0 : index
    %c0_29 = arith.constant 0 : index
    %c0_30 = arith.constant 0 : index
    %22 = vector.load %arg1[%c0_28, %c0_29, %c0_30] : memref<1x4x256xf32, #tpu.memory_space<vmem>>, vector<1x4x256xf32>
    %23 = vector.shape_cast %22 : vector<1x4x256xf32> to vector<4x256xf32>
    %c17_i32 = arith.constant 17 : i32
    %24 = tpu.dynamic_rotate %23 by %c17_i32 dim 1 : vector<4x256xf32>, i32 -> vector<4x256xf32>
    %25 = vector.broadcast %7 : vector<1x256xf32> to vector<4x256xf32>
    %26 = arith.mulf %24, %25 : vector<4x256xf32>
    %27 = arith.truncf %26 : vector<4x256xf32> to vector<4x256xbf16>
    %c0_31 = arith.constant 0 : index
    %c0_32 = arith.constant 0 : index
    %28 = vector.load %arg10[%c0_31, %c0_32] : memref<36x256xbf16, #tpu.memory_space<vmem>>, vector<4x256xbf16>
    tpu.vector_store %arg10[%c0_31, %c0_32], %27 {strides = array<i32>} : memref<36x256xbf16, #tpu.memory_space<vmem>>, vector<4x256xbf16>,
    %c16_i32 = arith.constant 16 : i32
    %29 = tpu.dynamic_rotate %23 by %c16_i32 dim 1 : vector<4x256xf32>, i32 -> vector<4x256xf32>
    %30 = vector.broadcast %9 : vector<1x256xf32> to vector<4x256xf32>
    %31 = arith.mulf %29, %30 : vector<4x256xf32>
    %32 = arith.truncf %31 : vector<4x256xf32> to vector<4x256xbf16>
    %c4 = arith.constant 4 : index
    %c0_33 = arith.constant 0 : index
    %33 = vector.load %arg10[%c4, %c0_33] : memref<36x256xbf16, #tpu.memory_space<vmem>>, vector<4x256xbf16>
    tpu.vector_store %arg10[%c4, %c0_33], %32 {strides = array<i32>} : memref<36x256xbf16, #tpu.memory_space<vmem>>, vector<4x256xbf16>,
    %c15_i32 = arith.constant 15 : i32
    %34 = tpu.dynamic_rotate %23 by %c15_i32 dim 1 : vector<4x256xf32>, i32 -> vector<4x256xf32>
    %35 = vector.broadcast %11 : vector<1x256xf32> to vector<4x256xf32>
    %36 = arith.mulf %34, %35 : vector<4x256xf32>
    %37 = arith.truncf %36 : vector<4x256xf32> to vector<4x256xbf16>
    %c8_34 = arith.constant 8 : index
    %c0_35 = arith.constant 0 : index
    %38 = vector.load %arg10[%c8_34, %c0_35] : memref<36x256xbf16, #tpu.memory_space<vmem>>, vector<4x256xbf16>
    tpu.vector_store %arg10[%c8_34, %c0_35], %37 {strides = array<i32>} : memref<36x256xbf16, #tpu.memory_space<vmem>>, vector<4x256xbf16>,
    %c1_i32 = arith.constant 1 : i32
    %39 = tpu.dynamic_rotate %23 by %c1_i32 dim 1 : vector<4x256xf32>, i32 -> vector<4x256xf32>
    %40 = vector.broadcast %13 : vector<1x256xf32> to vector<4x256xf32>
    %41 = arith.mulf %39, %40 : vector<4x256xf32>
    %42 = arith.truncf %41 : vector<4x256xf32> to vector<4x256xbf16>
    %c12 = arith.constant 12 : index
    %c0_36 = arith.constant 0 : index
    %43 = vector.load %arg10[%c12, %c0_36] : memref<36x256xbf16, #tpu.memory_space<vmem>>, vector<4x256xbf16>
    tpu.vector_store %arg10[%c12, %c0_36], %42 {strides = array<i32>} : memref<36x256xbf16, #tpu.memory_space<vmem>>, vector<4x256xbf16>,
    %44 = arith.truncf %23 : vector<4x256xf32> to vector<4x256xbf16>
    %c16 = arith.constant 16 : index
    %c0_37 = arith.constant 0 : index
    %45 = vector.load %arg10[%c16, %c0_37] : memref<36x256xbf16, #tpu.memory_space<vmem>>, vector<4x256xbf16>
    tpu.vector_store %arg10[%c16, %c0_37], %44 {strides = array<i32>} : memref<36x256xbf16, #tpu.memory_space<vmem>>, vector<4x256xbf16>,
    %c255_i32 = arith.constant 255 : i32
    %46 = tpu.dynamic_rotate %23 by %c255_i32 dim 1 : vector<4x256xf32>, i32 -> vector<4x256xf32>
    %47 = vector.broadcast %15 : vector<1x256xf32> to vector<4x256xf32>
    %48 = arith.mulf %46, %47 : vector<4x256xf32>
    %49 = arith.truncf %48 : vector<4x256xf32> to vector<4x256xbf16>
    %c20 = arith.constant 20 : index
    %c0_38 = arith.constant 0 : index
    %50 = vector.load %arg10[%c20, %c0_38] : memref<36x256xbf16, #tpu.memory_space<vmem>>, vector<4x256xbf16>
    tpu.vector_store %arg10[%c20, %c0_38], %49 {strides = array<i32>} : memref<36x256xbf16, #tpu.memory_space<vmem>>, vector<4x256xbf16>,
    %c241_i32 = arith.constant 241 : i32
    %51 = tpu.dynamic_rotate %23 by %c241_i32 dim 1 : vector<4x256xf32>, i32 -> vector<4x256xf32>
    %52 = vector.broadcast %17 : vector<1x256xf32> to vector<4x256xf32>
    %53 = arith.mulf %51, %52 : vector<4x256xf32>
    %54 = arith.truncf %53 : vector<4x256xf32> to vector<4x256xbf16>
    %c24 = arith.constant 24 : index
    %c0_39 = arith.constant 0 : index
    %55 = vector.load %arg10[%c24, %c0_39] : memref<36x256xbf16, #tpu.memory_space<vmem>>, vector<4x256xbf16>
    tpu.vector_store %arg10[%c24, %c0_39], %54 {strides = array<i32>} : memref<36x256xbf16, #tpu.memory_space<vmem>>, vector<4x256xbf16>,
    %c240_i32 = arith.constant 240 : i32
    %56 = tpu.dynamic_rotate %23 by %c240_i32 dim 1 : vector<4x256xf32>, i32 -> vector<4x256xf32>
    %57 = vector.broadcast %19 : vector<1x256xf32> to vector<4x256xf32>
    %58 = arith.mulf %56, %57 : vector<4x256xf32>
    %59 = arith.truncf %58 : vector<4x256xf32> to vector<4x256xbf16>
    %c28 = arith.constant 28 : index
    %c0_40 = arith.constant 0 : index
    %60 = vector.load %arg10[%c28, %c0_40] : memref<36x256xbf16, #tpu.memory_space<vmem>>, vector<4x256xbf16>
    tpu.vector_store %arg10[%c28, %c0_40], %59 {strides = array<i32>} : memref<36x256xbf16, #tpu.memory_space<vmem>>, vector<4x256xbf16>,
    %c239_i32 = arith.constant 239 : i32
    %61 = tpu.dynamic_rotate %23 by %c239_i32 dim 1 : vector<4x256xf32>, i32 -> vector<4x256xf32>
    %62 = vector.broadcast %21 : vector<1x256xf32> to vector<4x256xf32>
    %63 = arith.mulf %61, %62 : vector<4x256xf32>
    %64 = arith.truncf %63 : vector<4x256xf32> to vector<4x256xbf16>
    %c32 = arith.constant 32 : index
    %c0_41 = arith.constant 0 : index
    %65 = vector.load %arg10[%c32, %c0_41] : memref<36x256xbf16, #tpu.memory_space<vmem>>, vector<4x256xbf16>
    tpu.vector_store %arg10[%c32, %c0_41], %64 {strides = array<i32>} : memref<36x256xbf16, #tpu.memory_space<vmem>>, vector<4x256xbf16>,
    %c0_42 = arith.constant 0 : index
    %c0_43 = arith.constant 0 : index
    %66 = vector.load %arg10[%c0_42, %c0_43] : memref<36x256xbf16, #tpu.memory_space<vmem>>, vector<36x256xbf16>
    %cst = arith.constant dense<0.000000e+00> : vector<4x256xf32>
    %67 = tpu.matmul %0, %66, %cst {dimension_numbers = #tpu.dot_dimension_numbers<[1], [0], [0], [1], [0, 0, 1, 1], [], []>} : vector<4x36xbf16>, vector<36x256xbf16>, vector<4x256xf32> -> vector<4x256xf32>
    %68 = vector.broadcast %2 : vector<4x1xf32> to vector<4x256xf32>
    %69 = arith.mulf %67, %68 : vector<4x256xf32>
    %70 = vector.broadcast %3 : vector<4x1xf32> to vector<4x256xf32>
    %71 = arith.addf %69, %70 : vector<4x256xf32>
    %cst_44 = arith.constant 0.000000e+00 : f32
    %72 = vector.broadcast %cst_44 : f32 to vector<4x256xf32>
    %73 = arith.maximumf %71, %72 : vector<4x256xf32>
    %c17_i32_45 = arith.constant 17 : i32
    %74 = tpu.dynamic_rotate %73 by %c17_i32_45 dim 1 : vector<4x256xf32>, i32 -> vector<4x256xf32>
    %75 = vector.broadcast %7 : vector<1x256xf32> to vector<4x256xf32>
    %76 = arith.mulf %74, %75 : vector<4x256xf32>
    %77 = arith.truncf %76 : vector<4x256xf32> to vector<4x256xbf16>
    %c0_46 = arith.constant 0 : index
    %c0_47 = arith.constant 0 : index
    %78 = vector.load %arg10[%c0_46, %c0_47] : memref<36x256xbf16, #tpu.memory_space<vmem>>, vector<4x256xbf16>
    tpu.vector_store %arg10[%c0_46, %c0_47], %77 {strides = array<i32>} : memref<36x256xbf16, #tpu.memory_space<vmem>>, vector<4x256xbf16>,
    %c16_i32_48 = arith.constant 16 : i32
    %79 = tpu.dynamic_rotate %73 by %c16_i32_48 dim 1 : vector<4x256xf32>, i32 -> vector<4x256xf32>
    %80 = vector.broadcast %9 : vector<1x256xf32> to vector<4x256xf32>
    %81 = arith.mulf %79, %80 : vector<4x256xf32>
    %82 = arith.truncf %81 : vector<4x256xf32> to vector<4x256xbf16>
    %c4_49 = arith.constant 4 : index
    %c0_50 = arith.constant 0 : index
    %83 = vector.load %arg10[%c4_49, %c0_50] : memref<36x256xbf16, #tpu.memory_space<vmem>>, vector<4x256xbf16>
    tpu.vector_store %arg10[%c4_49, %c0_50], %82 {strides = array<i32>} : memref<36x256xbf16, #tpu.memory_space<vmem>>, vector<4x256xbf16>,
    %c15_i32_51 = arith.constant 15 : i32
    %84 = tpu.dynamic_rotate %73 by %c15_i32_51 dim 1 : vector<4x256xf32>, i32 -> vector<4x256xf32>
    %85 = vector.broadcast %11 : vector<1x256xf32> to vector<4x256xf32>
    %86 = arith.mulf %84, %85 : vector<4x256xf32>
    %87 = arith.truncf %86 : vector<4x256xf32> to vector<4x256xbf16>
    %c8_52 = arith.constant 8 : index
    %c0_53 = arith.constant 0 : index
    %88 = vector.load %arg10[%c8_52, %c0_53] : memref<36x256xbf16, #tpu.memory_space<vmem>>, vector<4x256xbf16>
    tpu.vector_store %arg10[%c8_52, %c0_53], %87 {strides = array<i32>} : memref<36x256xbf16, #tpu.memory_space<vmem>>, vector<4x256xbf16>,
    %c1_i32_54 = arith.constant 1 : i32
    %89 = tpu.dynamic_rotate %73 by %c1_i32_54 dim 1 : vector<4x256xf32>, i32 -> vector<4x256xf32>
    %90 = vector.broadcast %13 : vector<1x256xf32> to vector<4x256xf32>
    %91 = arith.mulf %89, %90 : vector<4x256xf32>
    %92 = arith.truncf %91 : vector<4x256xf32> to vector<4x256xbf16>
    %c12_55 = arith.constant 12 : index
    %c0_56 = arith.constant 0 : index
    %93 = vector.load %arg10[%c12_55, %c0_56] : memref<36x256xbf16, #tpu.memory_space<vmem>>, vector<4x256xbf16>
    tpu.vector_store %arg10[%c12_55, %c0_56], %92 {strides = array<i32>} : memref<36x256xbf16, #tpu.memory_space<vmem>>, vector<4x256xbf16>,
    %94 = arith.truncf %73 : vector<4x256xf32> to vector<4x256xbf16>
    %c16_57 = arith.constant 16 : index
    %c0_58 = arith.constant 0 : index
    %95 = vector.load %arg10[%c16_57, %c0_58] : memref<36x256xbf16, #tpu.memory_space<vmem>>, vector<4x256xbf16>
    tpu.vector_store %arg10[%c16_57, %c0_58], %94 {strides = array<i32>} : memref<36x256xbf16, #tpu.memory_space<vmem>>, vector<4x256xbf16>,
    %c255_i32_59 = arith.constant 255 : i32
    %96 = tpu.dynamic_rotate %73 by %c255_i32_59 dim 1 : vector<4x256xf32>, i32 -> vector<4x256xf32>
    %97 = vector.broadcast %15 : vector<1x256xf32> to vector<4x256xf32>
    %98 = arith.mulf %96, %97 : vector<4x256xf32>
    %99 = arith.truncf %98 : vector<4x256xf32> to vector<4x256xbf16>
    %c20_60 = arith.constant 20 : index
    %c0_61 = arith.constant 0 : index
    %100 = vector.load %arg10[%c20_60, %c0_61] : memref<36x256xbf16, #tpu.memory_space<vmem>>, vector<4x256xbf16>
    tpu.vector_store %arg10[%c20_60, %c0_61], %99 {strides = array<i32>} : memref<36x256xbf16, #tpu.memory_space<vmem>>, vector<4x256xbf16>,
    %c241_i32_62 = arith.constant 241 : i32
    %101 = tpu.dynamic_rotate %73 by %c241_i32_62 dim 1 : vector<4x256xf32>, i32 -> vector<4x256xf32>
    %102 = vector.broadcast %17 : vector<1x256xf32> to vector<4x256xf32>
    %103 = arith.mulf %101, %102 : vector<4x256xf32>
    %104 = arith.truncf %103 : vector<4x256xf32> to vector<4x256xbf16>
    %c24_63 = arith.constant 24 : index
    %c0_64 = arith.constant 0 : index
    %105 = vector.load %arg10[%c24_63, %c0_64] : memref<36x256xbf16, #tpu.memory_space<vmem>>, vector<4x256xbf16>
    tpu.vector_store %arg10[%c24_63, %c0_64], %104 {strides = array<i32>} : memref<36x256xbf16, #tpu.memory_space<vmem>>, vector<4x256xbf16>,
    %c240_i32_65 = arith.constant 240 : i32
    %106 = tpu.dynamic_rotate %73 by %c240_i32_65 dim 1 : vector<4x256xf32>, i32 -> vector<4x256xf32>
    %107 = vector.broadcast %19 : vector<1x256xf32> to vector<4x256xf32>
    %108 = arith.mulf %106, %107 : vector<4x256xf32>
    %109 = arith.truncf %108 : vector<4x256xf32> to vector<4x256xbf16>
    %c28_66 = arith.constant 28 : index
    %c0_67 = arith.constant 0 : index
    %110 = vector.load %arg10[%c28_66, %c0_67] : memref<36x256xbf16, #tpu.memory_space<vmem>>, vector<4x256xbf16>
    tpu.vector_store %arg10[%c28_66, %c0_67], %109 {strides = array<i32>} : memref<36x256xbf16, #tpu.memory_space<vmem>>, vector<4x256xbf16>,
    %c239_i32_68 = arith.constant 239 : i32
    %111 = tpu.dynamic_rotate %73 by %c239_i32_68 dim 1 : vector<4x256xf32>, i32 -> vector<4x256xf32>
    %112 = vector.broadcast %21 : vector<1x256xf32> to vector<4x256xf32>
    %113 = arith.mulf %111, %112 : vector<4x256xf32>
    %114 = arith.truncf %113 : vector<4x256xf32> to vector<4x256xbf16>
    %c32_69 = arith.constant 32 : index
    %c0_70 = arith.constant 0 : index
    %115 = vector.load %arg10[%c32_69, %c0_70] : memref<36x256xbf16, #tpu.memory_space<vmem>>, vector<4x256xbf16>
    tpu.vector_store %arg10[%c32_69, %c0_70], %114 {strides = array<i32>} : memref<36x256xbf16, #tpu.memory_space<vmem>>, vector<4x256xbf16>,
    %c0_71 = arith.constant 0 : index
    %c0_72 = arith.constant 0 : index
    %116 = vector.load %arg10[%c0_71, %c0_72] : memref<36x256xbf16, #tpu.memory_space<vmem>>, vector<36x256xbf16>
    %cst_73 = arith.constant dense<0.000000e+00> : vector<4x256xf32>
    %117 = tpu.matmul %1, %116, %cst_73 {dimension_numbers = #tpu.dot_dimension_numbers<[1], [0], [0], [1], [0, 0, 1, 1], [], []>} : vector<4x36xbf16>, vector<36x256xbf16>, vector<4x256xf32> -> vector<4x256xf32>
    %118 = vector.broadcast %4 : vector<4x1xf32> to vector<4x256xf32>
    %119 = arith.mulf %117, %118 : vector<4x256xf32>
    %120 = arith.addf %23, %119 : vector<4x256xf32>
    %121 = vector.broadcast %5 : vector<4x1xf32> to vector<4x256xf32>
    %122 = arith.addf %120, %121 : vector<4x256xf32>
    %c0_74 = arith.constant 0 : index
    %c0_75 = arith.constant 0 : index
    %c0_76 = arith.constant 0 : index
    %123 = vector.load %arg9[%c0_74, %c0_75, %c0_76] : memref<1x4x256xf32, #tpu.memory_space<vmem>>, vector<1x4x256xf32>
    %124 = vector.shape_cast %123 : vector<1x4x256xf32> to vector<4x256xf32>
    %125 = vector.shape_cast %122 : vector<4x256xf32> to vector<1x4x256xf32>
    tpu.vector_store %arg9[%c0_74, %c0_75, %c0_76], %125 {strides = array<i32>} : memref<1x4x256xf32, #tpu.memory_space<vmem>>, vector<1x4x256xf32>,
    return
  }
  func.func @transform_0(%arg0: i32) -> (i32, i32, i32) {
    %c0_i32 = arith.constant 0 : i32
    %c0_i32_0 = arith.constant 0 : i32
    %c0_i32_1 = arith.constant 0 : i32
    return %arg0, %c0_i32, %c0_i32_0 : i32, i32, i32
  }
  func.func @transform_1(%arg0: i32) -> (i32, i32) {
    %c0_i32 = arith.constant 0 : i32
    %c0_i32_0 = arith.constant 0 : i32
    %c0_i32_1 = arith.constant 0 : i32
    return %c0_i32, %c0_i32_0 : i32, i32
  }
  func.func @transform_2(%arg0: i32) -> (i32, i32) {
    %c0_i32 = arith.constant 0 : i32
    %c0_i32_0 = arith.constant 0 : i32
    %c0_i32_1 = arith.constant 0 : i32
    return %c0_i32, %c0_i32_0 : i32, i32
  }
  func.func @transform_3(%arg0: i32) -> (i32, i32) {
    %c0_i32 = arith.constant 0 : i32
    %c0_i32_0 = arith.constant 0 : i32
    %c0_i32_1 = arith.constant 0 : i32
    return %c0_i32, %c0_i32_0 : i32, i32
  }
  func.func @transform_4(%arg0: i32) -> (i32, i32) {
    %c0_i32 = arith.constant 0 : i32
    %c0_i32_0 = arith.constant 0 : i32
    %c0_i32_1 = arith.constant 0 : i32
    return %c0_i32, %c0_i32_0 : i32, i32
  }
  func.func @transform_5(%arg0: i32) -> (i32, i32) {
    %c0_i32 = arith.constant 0 : i32
    %c0_i32_0 = arith.constant 0 : i32
    %c0_i32_1 = arith.constant 0 : i32
    return %c0_i32, %c0_i32_0 : i32, i32
  }
  func.func @transform_6(%arg0: i32) -> (i32, i32) {
    %c0_i32 = arith.constant 0 : i32
    %c0_i32_0 = arith.constant 0 : i32
    %c0_i32_1 = arith.constant 0 : i32
    return %c0_i32, %c0_i32_0 : i32, i32
  }
  func.func @transform_7(%arg0: i32) -> (i32, i32, i32) {
    %c0_i32 = arith.constant 0 : i32
    %c0_i32_0 = arith.constant 0 : i32
    %c0_i32_1 = arith.constant 0 : i32
    %c0_i32_2 = arith.constant 0 : i32
    return %c0_i32, %c0_i32_0, %c0_i32_1 : i32, i32, i32
  }
  func.func @transform_8(%arg0: i32) -> (i32, i32, i32) {
    %c0_i32 = arith.constant 0 : i32
    %c0_i32_0 = arith.constant 0 : i32
    %c0_i32_1 = arith.constant 0 : i32
    return %arg0, %c0_i32, %c0_i32_0 : i32, i32, i32
  }
}

</mosaic_0001>

<bundles_post_ra>
// kernel: tpu_custom_call.1
= control target key start
LH: loop header
LB: loop body
LE: loop exit
PB: predicated region body
PF: predicated region fallthrough
CT: control target
= control target key end

     0   :  { %13 = vsyncpa [#allocation4], 0  ;;  %s1827_s0 = inlined_call_operand.vmem [shape: f32[2,4,256], index: 0, kind: input, shape index: {}]   ;;  %s1828_s1 = inlined_call_operand.hbm [shape: bf16[4,36], index: 1, kind: input, shape index: {}]   ;;  %s1829_s2 = inlined_call_operand.vmem [shape: f32[4,1], index: 2, kind: input, shape index: {}]   ;;  %s1830_s3 = inlined_call_operand.vmem [shape: f32[4,1], index: 3, kind: input, shape index: {}]   ;;  %s1831_s4 = inlined_call_operand.hbm [shape: bf16[4,36], index: 4, kind: input, shape index: {}]   ;;  %s1832_s5 = inlined_call_operand.vmem [shape: f32[4,1], index: 5, kind: input, shape index: {}]   ;;  %s1833_s6 = inlined_call_operand.vmem [shape: f32[4,1], index: 6, kind: input, shape index: {}]   ;;  %s1834_s7 = inlined_call_operand.vmem [shape: f32[9,1,256], index: 7, kind: input, shape index: {}]   ;;  %s1835_s8 = inlined_call_operand.hbm [shape: f32[2,4,256], index: 8, kind: output, shape index: {}]  }
   0x1   :  { %14 = vsyncpa [#allocation7], 0 }
   0x2   :  { %15 = vsyncpa [#allocation5], 0 }
   0x3   :  { %17 = vsyncpa [#allocation5 + $0x1], 0  ;;  %s1404_s27 = smov 0   ;;  %s1406_s28 = smov 0  }
   0x4   :  { %s1408_s29 = smov 0   ;;  %s1410_s30 = smov 0  }
   0x5 LB: > { %s1425_s9 = sadd.s32 4294967295, %s1344_s30   ;;  %s1052_s10 = sadd.s32 4294967294, %s1344_s30   ;;  %s1344_s30 = sphi %s1410_s30, %s1856_s30   ;;  %s1340_s29 = sphi %s1408_s29, %s1855_s29   ;;  %s1336_s28 = sphi %s1406_s28, %s1854_s28   ;;  %s1332_s27 = sphi %s1404_s27, %s1853_s27  }
   0x6   : > { %s1429_s11 = sadd.s32 1, %s1344_s30   ;;  %s203_s12 = sadd.s32 1, %s1340_s29 }
   0x7   : > { %s200_s13 = ssub.s32 %s1344_s30, %s1429_s11  ;;  %p213_p0 = scmp.ne.s32.totalorder %s1340_s29, %s1336_s28 }
   0x8   : > { %p201_p1 = scmp.eq.s32.totalorder %s200_s13, 0  ;;  %p214_p2 = scmp.eq.s32.totalorder %s1425_s9, 1 }
   0x9   : > { %p219_p3 = scmp.ne.s32.totalorder %s1336_s28, %s1332_s27  ;;  %p220_p4 = scmp.eq.s32.totalorder %s1052_s10, 1 }
   0xa   : > { %s1440_s14 = scalar_select %p201_p1, %s1340_s29, %s203_s12  }
   0xb   : > { %p1442_p5 = por %p214_p2, %p213_p0  ;;  %p1446_p6 = por %p220_p4, %p219_p3 }
   0xc   : > { %p1053_p7 = scmp.ge.s32.totalorder %s1344_s30, 1  ;;  %p227_p8 = scmp.lt.s32.totalorder %s1344_s30, 3 }
   0xd   : > { %s1841_s15 = scalar_select %p1442_p5, 1, 0 }
   0xe   : > { %s1842_s16 = scalar_select %p1446_p6, 1, 0 }
   0xf   : > { %p1836_p9 = scmp.eq.s32.totalorder %s1425_s9, 0  ;;  %p1453_p10 = pnand %p1053_p7, %p227_p8 }
  0x10   : > { %s1346_s18 = smov [#allocation3]   ;;  %s1347_s20 = smov [#allocation6]  }
  0x11   : > { %s1843_s17 = scalar_select %p1453_p10, 1, 0 }
  0x12   : > { %s240_s19 = sshll.u32 %s1346_s18, 4  ;;  %p1139_p11 = pneg %p1453_p10  ;;  %s241_s19 = int_to_ptr.vmem [resolvable:$true] %s240_s19 }
  0x13   : > { %s257_s21 = sshll.u32 %s1347_s20, 4  ;;  %s1218_s25 = scalar_lea.hbm %s1828_s1, 32  ;;  %s1465_s21 = int_to_ptr.vmem [resolvable:$true] %s257_s21 }
  0x14   : > { %p1461_p12 = pnand %p1836_p9, %p1139_p11  ;;  %p1219_p13 = scmp.ne.s32.totalorder %s1828_s1, %s1218_s25 }
  0x15   : > { %p1225_p3 = scmp.lt.u32.totalorder %s1218_s25, %s1828_s1 }
  0x16   : > { %p1220_p0 = pneg %p1461_p12 }
  0x18   : > { %p1221_p1 = pnand %p1220_p0, %p1219_p13 }
  0x1a   : > { %p1222_p2 = pneg %p1221_p1 }
  0x1c   : > { %p1227_p4 = pnand %p1225_p3, %p1222_p2 }
  0x1e   : > { %1230 = shalt.err (!%p1227_p4)
}
  0x1f   : > { %s1231_s18 = scalar_lea.vmem %s241_s19, 32  ;;  %p1239_p9 = scmp.lt.s32.totalorder %s241_s19, %s241_s19 }
  0x20   : > { %p1232_p7 = scmp.ne.s32.totalorder %s241_s19, %s1231_s18  ;;  %p1240_p6 = scmp.lt.s32.totalorder %s1231_s18, %s1231_s18 }
  0x22   : > { %p1234_p8 = pnand %p1232_p7, %p1220_p0  ;;  %p1241_p5 = por %p1240_p6, %p1239_p9 }
  0x24   : > { %p1235_p11 = pneg %p1234_p8 }
  0x26   : > { %p1242_p10 = pnand %p1241_p5, %p1235_p11 }
  0x28   : > { %1245 = shalt.err (!%p1242_p10)
}
  0x29   : > { %1142 = dma.hbm_to_vmem [thread:$0]  (!%p1461_p12), %s1828_s1, 32, %s241_s19, [#allocation4]  }
  0x2a   : > { %s1246_s26 = scalar_lea.hbm %s1831_s4, 32 }
  0x2b   : > { %p1247_p13 = scmp.ne.s32.totalorder %s1831_s4, %s1246_s26  ;;  %p1253_p9 = scmp.lt.u32.totalorder %s1246_s26, %s1831_s4 }
  0x2d   : > { %p1249_p6 = pnand %p1247_p13, %p1220_p0 }
  0x2f   : > { %p1250_p5 = pneg %p1249_p6 }
  0x31   : > { %p1255_p10 = pnand %p1253_p9, %p1250_p5 }
  0x33   : > { %1258 = shalt.err (!%p1255_p10)
}
  0x34   : > { %s1259_s19 = scalar_lea.vmem %s1465_s21, 32  ;;  %p1267_p4 = scmp.lt.s32.totalorder %s1465_s21, %s1465_s21 }
  0x35   : > { %p1260_p1 = scmp.ne.s32.totalorder %s1465_s21, %s1259_s19  ;;  %p1268_p7 = scmp.lt.s32.totalorder %s1259_s19, %s1259_s19 }
  0x37   : > { %p1262_p2 = pnand %p1260_p1, %p1220_p0  ;;  %p1269_p8 = por %p1268_p7, %p1267_p4 }
  0x39   : > { %p1263_p3 = pneg %p1262_p2 }
  0x3b   : > { %p1270_p11 = pnand %p1269_p8, %p1263_p3 }
  0x3d   : > { %1273 = shalt.err (!%p1270_p11)
}
  0x3e   : > { %1145 = dma.hbm_to_vmem [thread:$0]  (!%p1461_p12), %s1831_s4, 32, %s1465_s21, [#allocation7]  }
  0x3f   : > { %p1845_p13 = scmp.ne.s32.totalorder %s1843_s17, 0 }
  0x40   : > { %p1846_p6 = scmp.eq.s32.totalorder (!%p1845_p13), %s1425_s9, 0 }
  0x41   : > { %287 = sbr.rel (%p1845_p13) target bundleno = 862 (0x35e), region = 52 }
  0x48   : > { %1319 = dma.done.wait (%p1846_p6), [#allocation4], 32   ;;  %p1847_p0 = pmov %p1846_p6 }
  0x4a   : > { %1321 = vsyncadd (%p1847_p0), [#allocation4], 4294967264  ;;  %p1848_p5 = pmov %p1847_p0 }
  0x4b   : > { %p1849_p9 = pmov %p1847_p0 }
  0x4c   : > { %1323 = dma.done.wait (%p1848_p5), [#allocation7], 32  }
  0x4d   : > { %1325 = vsyncadd (%p1849_p9), [#allocation7], 4294967264  ;;  %p325_p10 = scmp.lt.s32.totalorder %s1425_s9, 1  ;;  %s1348_s26 = smov 1   ;;  %v1356_v3 = vmov 0   ;;  %v360_v6 = vlaneseq  ;;  %vm637_vm8 = vcmask 1041408  }
  0x4e   : > { %s1349_s10 = smov 16   ;;  %s1350_s12 = smov 17   ;;  %676 = vmatprep.mubr.bf16.mxu0 %v1356_v3  ;;  %1199 = vset.pattern.permute.xlu0 %v1356_v3  ;;  %v333_v4 = vld [vmem:[%s1829_s2] sm:$0xf]  ;;  %v1065_v11 = vld [vmem:[%s1834_s7 + $0x6] sm:$0x3] }
  0x4f   : > { %s326_s22 = scalar_select %p325_p10, %s1425_s9, 1  ;;  %1200 = vset.pattern.permute.xlu1 %v1356_v3  ;;  %921 = vmatprep.mubr.bf16.mxu1 %v1356_v3  ;;  %v334_v5 = vld [vmem:[%s1830_s3] sm:$0xf]  ;;  %v1564_v7 = vshrl.u32 %v360_v6, 7  ;;  %v1566_v8 = vand.u32 127, %v360_v6  ;;  %vm633_vm9 = vcmask 293888  }
  0x50   : > { %s1351_s13 = smov 15   ;;  %s1352_s18 = smov 127   ;;  %v337_v16 = vld [vmem:[%s1834_s7] sm:$0x3]  ;;  %v1063_v17 = vld [vmem:[%s1834_s7 + $0x2] sm:$0x3] }
  0x51   : > { %s1109_s21 = sshll.u32 %s326_s22, 3  ;;  %s1353_s19 = smov 112   ;;  %v1569_v9 = vsub.s32 0, %v1564_v7  ;;  %v1572_v10 = vsub.s32 1, %v1564_v7  ;;  %vm450_vm0 = vcmp.lt.s32.totalorder %v1566_v8, 1  ;;  %vm362_vm1 = vcmp.lt.s32.totalorder %v1566_v8, 17 }
  0x52   : > { %s329_s25 = scalar_lea.vmem %s1827_s0, %s1109_s21  ;;  %s1354_s20 = smov 113   ;;  %vm391_vm2 = vcmp.lt.s32.totalorder %v1566_v8, 16  ;;  %v1064_v23 = vld [vmem:[%s1834_s7 + $0x4] sm:$0x3]  ;;  %vm421_vm3 = vcmp.lt.s32.totalorder %v1566_v8, 15  ;;  %vm489_vm4 = vcmp.lt.s32.totalorder %v1566_v8, 127 }
  0x53   : > { %v1529_v0 = vld [vmem:[%s329_s25] sm:$0xff]  ;;  %s1839_s23 = smov 111   ;;  %v1579_v14 = vrot.slane %v1065_v11, %v1569_v9  ;;  %v1582_v15 = vrot.slane %v1065_v11, %v1572_v10  ;;  %v1596_v22 = vrot.slane %v337_v16, %v1569_v9  ;;  %v1605_v26 = vrot.slane %v337_v16, %v1572_v10  ;;  %v1066_v43 = vld [vmem:[%s1834_s7 + $0xa] sm:$0x3]  ;;  %v1068_v55 = vld [vmem:[%s1834_s7 + $0xe] sm:$0x3] }
  0x54   : > { %446 = vrot.lane.b32.xlu1 %v1529_v0, %s1348_s26  ;;  %387 = vrot.lane.b32.xlu0 %v1529_v0, %s1349_s10  ;;  %v354_v1 = vcombine.high %v1529_v0, %v1529_v0  ;;  %v1608_v27 = vrot.slane %v1063_v17, %v1569_v9  ;;  %v1611_v28 = vrot.slane %v1063_v17, %v1572_v10  ;;  %vm548_vm5 = vcmp.lt.s32.totalorder %v1566_v8, 112  ;;  %p1851_p1 = scmp.ne.s32.totalorder %s1841_s15, 0 }
  0x55   : > { %v1615_v32 = vrot.slane %v1064_v23, %v1569_v9  ;;  %v1618_v33 = vrot.slane %v1064_v23, %v1572_v10  ;;  %v1643_v52 = vrot.slane %v1066_v43, %v1569_v9  ;;  %v1646_v53 = vrot.slane %v1066_v43, %v1572_v10 }
  0x56   : > { %v1114_v2 = vpack.c.bf16 %v354_v1, %v1529_v0  ;;  %v1659_v63 = vrot.slane %v1068_v55, %v1569_v9  ;;  %vm519_vm6 = vcmp.lt.s32.totalorder %v1566_v8, 113  ;;  %vm578_vm7 = vcmp.lt.s32.totalorder %v1566_v8, 111 }
  0x58   : > { %356 = vrot.lane.b32.xlu0 %v1529_v0, %s1350_s12  ;;  %448 = vrot.lane.b32.xlu1 %v354_v1, %s1348_s26  ;;  %484 = vst [vmem:[#allocation2 + $0x10] sm:$0x33] %v1114_v2  ;;  %v1067_v2 = vld [vmem:[%s1834_s7 + $0xc] sm:$0x3] }
  0x5c   : > { %358 = vrot.lane.b32.xlu1 %v354_v1, %s1350_s12  ;;  %389 = vrot.lane.b32.xlu0 %v354_v1, %s1349_s10 }
  0x60   : > { %419 = vrot.lane.b32.xlu1 %v354_v1, %s1351_s13  ;;  %417 = vrot.lane.b32.xlu0 %v1529_v0, %s1351_s13 }
  0x64   : > { %487 = vrot.lane.b32.xlu1 %v354_v1, %s1352_s18  ;;  %485 = vrot.lane.b32.xlu0 %v1529_v0, %s1352_s18 }
  0x68   : > { %546 = vrot.lane.b32.xlu1 %v354_v1, %s1353_s19  ;;  %544 = vrot.lane.b32.xlu0 %v1529_v0, %s1353_s19 }
  0x6c   : > { %517 = vrot.lane.b32.xlu1 %v354_v1, %s1354_s20  ;;  %515 = vrot.lane.b32.xlu0 %v1529_v0, %s1354_s20 }
  0x70   : > { %576 = vrot.lane.b32.xlu1 %v354_v1, %s1839_s23  ;;  %574 = vrot.lane.b32.xlu0 %v1529_v0, %s1839_s23  ;;  %v1662_v1 = vrot.slane %v1068_v55, %v1572_v10 }
  0x74   : > { %687 = vperm.xlu0 %1199, %v333_v4   ;;  %694 = vperm.xlu1 %1200, %v334_v5  }
  0xc6   : > { %v447_v12 = vpop.permute.xlu1 %446  ;;  %v388_v13 = vpop.permute.xlu0 %387 }
  0xca   : > { %v357_v18 = vpop.permute.xlu0 %356  ;;  %v449_v19 = vpop.permute.xlu1 %448 }
  0xcb   : > { %v451_v20 = vsel %vm450_vm0, %v447_v12, %v449_v19  ;;  %v452_v21 = vsel %vm450_vm0, %v449_v19, %v447_v12  ;;  %v1673_v12 = vrot.slane %v1067_v2, %v1569_v9  ;;  %v1069_v19 = vld [vmem:[%s1834_s7 + $0x10] sm:$0x3] }
  0xcc   : > { %v464_v24 = vmul.f32 %v1579_v14, %v452_v21  ;;  %v465_v25 = vmul.f32 %v1582_v15, %v451_v20 }
  0xce   : > { %v1113_v29 = vpack.c.bf16 %v465_v25, %v464_v24  ;;  %v359_v30 = vpop.permute.xlu1 %358  ;;  %v390_v31 = vpop.permute.xlu0 %389 }
  0xcf   : > { %v363_v34 = vsel %vm362_vm1, %v357_v18, %v359_v30  ;;  %v364_v35 = vsel %vm362_vm1, %v359_v30, %v357_v18  ;;  %v392_v36 = vsel %vm391_vm2, %v388_v13, %v390_v31  ;;  %v393_v37 = vsel %vm391_vm2, %v390_v31, %v388_v13 }
  0xd0   : > { %v473_v38 = vrot.slane %v1113_v29, 6  ;;  %v376_v39 = vmul.f32 %v1596_v22, %v364_v35  ;;  %v377_v40 = vmul.f32 %v1605_v26, %v363_v34  ;;  %v405_v41 = vmul.f32 %v1608_v27, %v393_v37 }
  0xd1   : > { %v406_v42 = vmul.f32 %v1611_v28, %v392_v36  ;;  %v1678_v18 = vrot.slane %v1067_v2, %v1572_v10  ;;  %v1689_v29 = vrot.slane %v1069_v19, %v1569_v9  ;;  %v1694_v37 = vrot.slane %v1069_v19, %v1572_v10 }
  0xd2   : > { %475 = vst [vmem:[#allocation2 + $0x8] sm:$0xcc] %v473_v38  ;;  %v1110_v44 = vpack.c.bf16 %v377_v40, %v376_v39  ;;  %v420_v45 = vpop.permute.xlu1 %419  ;;  %v418_v46 = vpop.permute.xlu0 %417 }
  0xd3   : > { %v1111_v47 = vpack.c.bf16 %v406_v42, %v405_v41  ;;  %v422_v48 = vsel %vm421_vm3, %v418_v46, %v420_v45  ;;  %v423_v49 = vsel %vm421_vm3, %v420_v45, %v418_v46 }
  0xd4   : > { %386 = vst [vmem:[#allocation2] sm:$0x33] %v1110_v44  ;;  %v435_v50 = vmul.f32 %v1615_v32, %v423_v49  ;;  %v436_v51 = vmul.f32 %v1618_v33, %v422_v48 }
  0xd5   : > { %v414_v54 = vrot.slane %v1111_v47, 6 }
  0xd6   : > { %v1112_v56 = vpack.c.bf16 %v436_v51, %v435_v50  ;;  %v488_v57 = vpop.permute.xlu1 %487  ;;  %v486_v58 = vpop.permute.xlu0 %485  ;;  %v331_v50 = vld [vmem:[#allocation3] sm:$0x3] }
  0xd7   : > { %416 = vst [vmem:[#allocation2] sm:$0xcc] %v414_v54  ;;  %v490_v59 = vsel %vm489_vm4, %v486_v58, %v488_v57  ;;  %v491_v60 = vsel %vm489_vm4, %v488_v57, %v486_v58 }
  0xd8   : > { %445 = vst [vmem:[#allocation2 + $0x8] sm:$0x33] %v1112_v56  ;;  %v503_v61 = vmul.f32 %v1643_v52, %v490_v59  ;;  %v504_v62 = vmul.f32 %v1646_v53, %v491_v60 }
  0xda   : > { %v1115_v3 = vpack.c.bf16 %v504_v62, %v503_v61  ;;  %v547_v4 = vpop.permute.xlu1 %546  ;;  %v545_v5 = vpop.permute.xlu0 %544 }
  0xdb   : > { %v549_v6 = vsel %vm548_vm5, %v545_v5, %v547_v4  ;;  %v550_v11 = vsel %vm548_vm5, %v547_v4, %v545_v5  ;;  %v335_v5 = vld [vmem:[%s1832_s5] sm:$0xf] }
  0xdc   : > { %v512_v13 = vrot.slane %v1115_v3, 6  ;;  %v562_v16 = vmul.f32 %v1659_v63, %v549_v6  ;;  %v563_v17 = vmul.f32 %v1662_v1, %v550_v11  ;;  %v336_v6 = vld [vmem:[%s1833_s6] sm:$0xf] }
  0xde   : > { %514 = vst [vmem:[#allocation2 + $0x10] sm:$0xcc] %v512_v13  ;;  %v1117_v20 = vpack.c.bf16 %v563_v17, %v562_v16  ;;  %v518_v21 = vpop.permute.xlu1 %517  ;;  %v516_v23 = vpop.permute.xlu0 %515 }
  0xdf   : > { %v520_v24 = vsel %vm519_vm6, %v516_v23, %v518_v21  ;;  %v521_v25 = vsel %vm519_vm6, %v518_v21, %v516_v23  ;;  %v1202_v30 = vld [vmem:[#allocation2 + $0x4] ss:$8 sps:$4 sm:$0xff]   ;;  %v1204_v31 = vld [vmem:[#allocation2] ss:$8 sps:$4 sm:$0xff]  }
  0xe0   : > { %v571_v34 = vrot.slane %v1117_v20, 6  ;;  %v533_v35 = vmul.f32 %v1673_v12, %v520_v24  ;;  %v534_v36 = vmul.f32 %v1678_v18, %v521_v25  ;;  %644 = vmatprep.subr.bf16.mxu0 %v1202_v30 }
  0xe1   : > { %645 = vmatpush1.bf16.msra.mxu0 %v1204_v31 }
  0xe2   : > { %573 = vst [vmem:[#allocation2 + $0x18] sm:$0xcc] %v571_v34  ;;  %v1116_v38 = vpack.c.bf16 %v534_v36, %v533_v35  ;;  %v577_v39 = vpop.permute.xlu1 %576  ;;  %v575_v40 = vpop.permute.xlu0 %574 }
  0xe3   : > { %v579_v9 = vsel %vm578_vm7, %v575_v40, %v577_v39  ;;  %v580_v41 = vsel %vm578_vm7, %v577_v39, %v575_v40 }
  0xe4   : > { %543 = vst [vmem:[#allocation2 + $0x18] sm:$0x33] %v1116_v38  ;;  %v592_v42 = vmul.f32 %v1689_v29, %v579_v9  ;;  %v593_v43 = vmul.f32 %v1694_v37, %v580_v41 }
  0xe6   : > { %v1118_v44 = vpack.c.bf16 %v593_v43, %v592_v42 }
  0xe8   : > { %602 = vst [vmem:[#allocation2 + $0x20] sm:$0x33] %v1118_v44 }
  0xeb   : > { %v1205_v10 = vld [vmem:[#allocation2 + $0x14] ss:$8 sps:$4 sm:$0xff]   ;;  %v1207_v45 = vld [vmem:[#allocation2 + $0x10] ss:$8 sps:$4 sm:$0xff]  }
  0xec   : > { %646 = vmatprep.subr.bf16.mxu0 %v1205_v10 }
  0xed   : > { %647 = vmatpush1.bf16.msra.mxu0 %v1207_v45 }
  0xef   : > { %v607_v46 = vld [vmem:[#allocation2 + $0x20] sm:$0x33] }
  0xf0   : > { %v1084_v47 = vcombine.high %v607_v46, %v607_v46  ;;  %v1083_v48 = vcombine.low %v607_v46, %v607_v46 }
  0xf2   : > { %1085 = vmatprep.subr.msk.bf16.mxu0 %vm637_vm8, %v1084_v47  ;;  %v639_v49 = vsel %vm637_vm8, %v1083_v48, 0 }
  0xf3   : > { %649 = vmatpush1.bf16.msra.mxu0 %v639_v49  ;;  %v688_v51 = vpop.permute.xlu0 %687  ;;  %v695_v55 = vpop.permute.xlu1 %694 }
  0xf6   : > { %1086 = vmatmul.mubr.msk.bf16.vlgmr.msra.gmra.mrb[0].mxu0 %vm633_vm9, %v331_v50 }
 0x1c9   : > { %v678_v54 = vpop.f32.mrb[0].mxu0 }
 0x1ca   : > { %v690_v56 = vmul.f32 %v688_v51, %v678_v54  ;;  %v680_v57 = vpop.f32.mrb[1].mxu0 }
 0x1cb   : > { %v691_v58 = vmul.f32 %v688_v51, %v680_v57  ;;  %v682_v59 = vpop.f32.mrb[2].mxu0 }
 0x1cc   : > { %v697_v60 = vadd.f32 %v695_v55, %v690_v56  ;;  %v683_v61 = vpop.f32.mrb[3].mxu0 }
 0x1cd   : > { %v698_v62 = vadd.f32 %v695_v55, %v691_v58 }
 0x1ce   : > { %v699_v2 = vmax.f32 %v697_v60, 0.0 }
 0x1cf   : > { %v700_v3 = vmax.f32 %v698_v62, 0.0 }
 0x1d0   : > { %718 = vrot.lane.b32.xlu1 %v699_v2, %s1349_s10 }
 0x1d1   : > { %v1123_v4 = vpack.c.bf16 %v700_v3, %v699_v2  ;;  %720 = vrot.lane.b32.xlu0 %v700_v3, %s1349_s10 }
 0x1d3   : > { %779 = vst [vmem:[#allocation2 + $0x10] sm:$0x33] %v1123_v4 }
 0x1d4   : > { %753 = vrot.lane.b32.xlu1 %v699_v2, %s1348_s26 }
 0x1d5   : > { %755 = vrot.lane.b32.xlu0 %v700_v3, %s1348_s26  ;;  %s1850_s26 = smov 111  }
 0x1d8   : > { %701 = vrot.lane.b32.xlu1 %v699_v2, %s1350_s12 }
 0x1d9   : > { %703 = vrot.lane.b32.xlu0 %v700_v3, %s1350_s12 }
 0x1dc   : > { %736 = vrot.lane.b32.xlu1 %v699_v2, %s1351_s13 }
 0x1dd   : > { %738 = vrot.lane.b32.xlu0 %v700_v3, %s1351_s13 }
 0x1e0   : > { %780 = vrot.lane.b32.xlu1 %v699_v2, %s1352_s18 }
 0x1e1   : > { %782 = vrot.lane.b32.xlu0 %v700_v3, %s1352_s18  ;;  %s322_s18 = sand.u32 1, %s1336_s28  }
 0x1e4   : > { %815 = vrot.lane.b32.xlu1 %v699_v2, %s1353_s19 }
 0x1e5   : > { %817 = vrot.lane.b32.xlu0 %v700_v3, %s1353_s19  ;;  %s1060_s19 = sshll.u32 %s322_s18, 3 }
 0x1e6   : > { %s324_s17 = scalar_lea.vmem [#allocation8], %s1060_s19 }
 0x1e7   : > { %s971_s25 = sshll.u32 %s324_s17, 4  ;;  %s1787_s25 = int_to_ptr.vmem [resolvable:$true] %s971_s25 }
 0x1e8   : > { %798 = vrot.lane.b32.xlu1 %v699_v2, %s1354_s20  ;;  %s1274_s10 = scalar_lea.vmem %s1787_s25, 128 }
 0x1e9   : > { %800 = vrot.lane.b32.xlu0 %v700_v3, %s1354_s20  ;;  %s1128_s20 = sshll.u32 %s1425_s9, 7  ;;  %p1275_p12 = scmp.ne.s32.totalorder %s1787_s25, %s1274_s10 }
 0x1ea   : > { %s1785_s21 = scalar_lea.hbm %s1835_s8, %s1128_s20  ;;  %s1358_s9 = smov [#allocation8]  }
 0x1eb   : > { %p1276_p2 = pnand %p1275_p12, %p1851_p1  ;;  %s1278_s12 = sshll.u32 %s1358_s9, 4  ;;  %s1279_s12 = int_to_ptr.vmem [resolvable:$false] %s1278_s12 }
 0x1ec   : > { %833 = vrot.lane.b32.xlu1 %v699_v2, %s1850_s26  ;;  %s1280_s13 = scalar_lea.vmem %s1279_s12, 256  ;;  %p1281_p4 = scmp.lt.s32.totalorder %s1787_s25, %s1279_s12 }
 0x1ed   : > { %835 = vrot.lane.b32.xlu0 %v700_v3, %s1850_s26  ;;  %s957_s26 = scalar_lea.sflag [#allocation5], %s322_s18  ;;  %p1277_p3 = pneg %p1276_p2 }
 0x1ee   : > { %p1282_p7 = scmp.lt.s32.totalorder %s1280_s13, %s1274_s10 }
 0x1f0   : > { %932 = vperm.xlu1 %1200, %v335_v5   ;;  %p1283_p8 = por %p1282_p7, %p1281_p4 }
 0x1f1   : > { %944 = vperm.xlu0 %1199, %v336_v6  }
 0x1f2   : > { %p1284_p11 = pnand %p1283_p8, %p1277_p3 }
 0x242   : > { %v719_v11 = vpop.permute.xlu1 %718 }
 0x243   : > { %v721_v13 = vpop.permute.xlu0 %720 }
 0x244   : > { %v722_v16 = vsel %vm391_vm2, %v719_v11, %v721_v13  ;;  %v723_v17 = vsel %vm391_vm2, %v721_v13, %v719_v11 }
 0x245   : > { %v724_v19 = vmul.f32 %v723_v17, %v1608_v27  ;;  %v725_v20 = vmul.f32 %v722_v16, %v1611_v28 }
 0x246   : > { %v754_v21 = vpop.permute.xlu1 %753 }
 0x247   : > { %v1120_v23 = vpack.c.bf16 %v725_v20, %v724_v19  ;;  %v756_v24 = vpop.permute.xlu0 %755 }
 0x248   : > { %v757_v25 = vsel %vm450_vm0, %v754_v21, %v756_v24  ;;  %v758_v30 = vsel %vm450_vm0, %v756_v24, %v754_v21  ;;  %v332_v24 = vld [vmem:[#allocation6] sm:$0x3] }
 0x249   : > { %v733_v31 = vrot.slane %v1120_v23, 6  ;;  %v759_v34 = vmul.f32 %v758_v30, %v1579_v14  ;;  %v760_v35 = vmul.f32 %v757_v25, %v1582_v15 }
 0x24a   : > { %v702_v36 = vpop.permute.xlu1 %701 }
 0x24b   : > { %735 = vst [vmem:[#allocation2] sm:$0xcc] %v733_v31  ;;  %v1122_v38 = vpack.c.bf16 %v760_v35, %v759_v34  ;;  %v704_v27 = vpop.permute.xlu0 %703 }
 0x24c   : > { %v705_v28 = vsel %vm362_vm1, %v702_v36, %v704_v27  ;;  %v706_v39 = vsel %vm362_vm1, %v704_v27, %v702_v36 }
 0x24d   : > { %v768_v40 = vrot.slane %v1122_v38, 6  ;;  %v707_v9 = vmul.f32 %v706_v39, %v1596_v22  ;;  %v708_v41 = vmul.f32 %v705_v28, %v1605_v26 }
 0x24e   : > { %v737_v42 = vpop.permute.xlu1 %736 }
 0x24f   : > { %770 = vst [vmem:[#allocation2 + $0x8] sm:$0xcc] %v768_v40  ;;  %v1119_v14 = vpack.c.bf16 %v708_v41, %v707_v9  ;;  %v739_v43 = vpop.permute.xlu0 %738 }
 0x250   : > { %v740_v15 = vsel %vm421_vm3, %v737_v42, %v739_v43  ;;  %v741_v44 = vsel %vm421_vm3, %v739_v43, %v737_v42 }
 0x251   : > { %717 = vst [vmem:[#allocation2] sm:$0x33] %v1119_v14  ;;  %v742_v10 = vmul.f32 %v741_v44, %v1615_v32  ;;  %v743_v45 = vmul.f32 %v740_v15, %v1618_v33 }
 0x252   : > { %v781_v46 = vpop.permute.xlu1 %780 }
 0x253   : > { %v1121_v47 = vpack.c.bf16 %v743_v45, %v742_v10  ;;  %v783_v22 = vpop.permute.xlu0 %782 }
 0x254   : > { %v784_v26 = vsel %vm489_vm4, %v781_v46, %v783_v22  ;;  %v785_v48 = vsel %vm489_vm4, %v783_v22, %v781_v46 }
 0x255   : > { %752 = vst [vmem:[#allocation2 + $0x8] sm:$0x33] %v1121_v47  ;;  %v786_v49 = vmul.f32 %v784_v26, %v1643_v52  ;;  %v787_v50 = vmul.f32 %v785_v48, %v1646_v53 }
 0x256   : > { %v816_v51 = vpop.permute.xlu1 %815 }
 0x257   : > { %v1124_v54 = vpack.c.bf16 %v787_v50, %v786_v49  ;;  %v818_v55 = vpop.permute.xlu0 %817 }
 0x258   : > { %v819_v32 = vsel %vm548_vm5, %v816_v51, %v818_v55  ;;  %v820_v33 = vsel %vm548_vm5, %v818_v55, %v816_v51 }
 0x259   : > { %v795_v56 = vrot.slane %v1124_v54, 6  ;;  %v821_v57 = vmul.f32 %v819_v32, %v1659_v63  ;;  %v822_v58 = vmul.f32 %v820_v33, %v1662_v1 }
 0x25a   : > { %v799_v59 = vpop.permute.xlu1 %798 }
 0x25b   : > { %797 = vst [vmem:[#allocation2 + $0x10] sm:$0xcc] %v795_v56  ;;  %v1126_v60 = vpack.c.bf16 %v822_v58, %v821_v57  ;;  %v801_v52 = vpop.permute.xlu0 %800 }
 0x25c   : > { %v802_v53 = vsel %vm519_vm6, %v799_v59, %v801_v52  ;;  %v803_v61 = vsel %vm519_vm6, %v801_v52, %v799_v59  ;;  %v1210_v62 = vld [vmem:[#allocation2 + $0x4] ss:$8 sps:$4 sm:$0xff]   ;;  %v1212_v2 = vld [vmem:[#allocation2] ss:$8 sps:$4 sm:$0xff]  }
 0x25d   : > { %v830_v3 = vrot.slane %v1126_v60, 6  ;;  %v804_v4 = vmul.f32 %v802_v53, %v1673_v12  ;;  %v805_v5 = vmul.f32 %v803_v61, %v1678_v18  ;;  %889 = vmatprep.subr.bf16.mxu1 %v1210_v62 }
 0x25e   : > { %v834_v63 = vpop.permute.xlu1 %833  ;;  %890 = vmatpush1.bf16.msra.mxu1 %v1212_v2 }
 0x25f   : > { %832 = vst [vmem:[#allocation2 + $0x18] sm:$0xcc] %v830_v3  ;;  %v1125_v1 = vpack.c.bf16 %v805_v5, %v804_v4  ;;  %v836_v6 = vpop.permute.xlu0 %835 }
 0x260   : > { %v837_v11 = vsel %vm578_vm7, %v834_v63, %v836_v6  ;;  %v838_v13 = vsel %vm578_vm7, %v836_v6, %v834_v63 }
 0x261   : > { %814 = vst [vmem:[#allocation2 + $0x18] sm:$0x33] %v1125_v1  ;;  %v839_v16 = vmul.f32 %v837_v11, %v1689_v29  ;;  %v840_v17 = vmul.f32 %v838_v13, %v1694_v37  ;;  %v1357_v29 = vmov 839922192  }
 0x262   : > { %v947_v37 = vunpack.c.l.s4 %v1357_v29 }
 0x263   : > { %v1127_v12 = vpack.c.bf16 %v840_v17, %v839_v16 }
 0x264   : > { %v948_v25 = vunpack.c.0.s8 %v947_v37 }
 0x265   : > { %849 = vst [vmem:[#allocation2 + $0x20] sm:$0x33] %v1127_v12 }
 0x266   : > { %v951_v36 = vsub.s32 %v948_v25, %v1564_v7 }
 0x268   : > { %v1213_v18 = vld [vmem:[#allocation2 + $0x14] ss:$8 sps:$4 sm:$0xff]   ;;  %v1215_v19 = vld [vmem:[#allocation2 + $0x10] ss:$8 sps:$4 sm:$0xff]  }
 0x269   : > { %891 = vmatprep.subr.bf16.mxu1 %v1213_v18 }
 0x26a   : > { %892 = vmatpush1.bf16.msra.mxu1 %v1215_v19 }
 0x26c   : > { %v854_v20 = vld [vmem:[#allocation2 + $0x20] sm:$0x33] }
 0x26d   : > { %v1101_v21 = vcombine.high %v854_v20, %v854_v20  ;;  %v1100_v23 = vcombine.low %v854_v20, %v854_v20 }
 0x26f   : > { %1102 = vmatprep.subr.msk.bf16.mxu1 %vm637_vm8, %v1101_v21  ;;  %v884_v8 = vsel %vm637_vm8, %v1100_v23, 0  ;;  %v933_v30 = vpop.permute.xlu1 %932 }
 0x270   : > { %894 = vmatpush1.bf16.msra.mxu1 %v884_v8  ;;  %v945_v28 = vpop.permute.xlu0 %944 }
 0x271   : > { %v952_v9 = vrot.slane %v945_v28, %v951_v36 }
 0x273   : > { %1103 = vmatmul.mubr.msk.bf16.vlgmr.msra.gmra.mrb[0].mxu1 %vm633_vm9, %v332_v24 }
 0x346   : > { %v923_v31 = vpop.f32.mrb[0].mxu1 }
 0x347   : > { %v935_v34 = vmul.f32 %v933_v30, %v923_v31  ;;  %v925_v35 = vpop.f32.mrb[1].mxu1 }
 0x348   : > { %v936_v38 = vmul.f32 %v933_v30, %v925_v35  ;;  %v927_v27 = vpop.f32.mrb[2].mxu1 }
 0x349   : > { %v928_v39 = vpop.f32.mrb[3].mxu1 }
 0x34a   : > { %v939_v40 = vcombine.low %v935_v34, %v936_v38 }
 0x34c   : > { %v941_v41 = vadd.f32 %v939_v40, %v1529_v0 }
 0x34e   : > { %v954_v42 = vadd.f32 %v952_v9, %v941_v41 }
 0x350   : > { %955 = vst [vmem:[%s324_s17] sm:$0xff] %v954_v42 }
 0x351   : > { %1287 = shalt.err (!%p1284_p11)
}
 0x352   : > { %s1288_s24 = scalar_lea.hbm %s1785_s21, 128  ;;  %s1292_s20 = scalar_lea.hbm %s1835_s8, 256 }
 0x353   : > { %p1289_p13 = scmp.ne.s32.totalorder %s1785_s21, %s1288_s24  ;;  %p1293_p5 = scmp.lt.u32.totalorder %s1785_s21, %s1835_s8 }
 0x354   : > { %p1294_p9 = scmp.lt.u32.totalorder %s1292_s20, %s1288_s24  ;;  %p1296_p12 = scmp.lt.u32.totalorder %s1288_s24, %s1785_s21 }
 0x355   : > { %p1290_p6 = pnand %p1289_p13, %p1851_p1 }
 0x356   : > { %p1295_p10 = por %p1294_p9, %p1293_p5 }
 0x357   : > { %p1291_p0 = pneg %p1290_p6 }
 0x358   : > { %p1297_p2 = por %p1296_p12, %p1295_p10 }
 0x35a   : > { %p1298_p3 = pnand %p1297_p2, %p1291_p0 }
 0x35c   : > { %1301 = shalt.err (!%p1298_p3)
}
 0x35d   : > { %1137 = dma.vmem_to_hbm [thread:$0]  (%p1851_p1), %s1787_s25, 128, %s1785_s21, %s957_s26  }
 0x35e PF: > { %p1154_p4 = scmp.ge.s32.totalorder %s1344_s30, 2  ;;  %s983_s23 = sand.u32 1, %s1332_s27  }
 0x35f   : > { %p1852_p7 = scmp.ne.s32.totalorder %s1842_s16, 0  ;;  %s984_s10 = scalar_lea.sflag [#allocation5], %s983_s23 }
 0x361   : > { %p1147_p8 = pnand %p1154_p4, %p1852_p7 }
 0x363   : > { %1327 = dma.done.wait (!%p1147_p8), %s984_s10, 128  }
 0x364   : > { %1329 = vsyncadd (!%p1147_p8), %s984_s10, 4294967168  ;;  %p20_p11 = scmp.ge.s32.totalorder %s1429_s11, 4   ;;  %s1853_s27 = smov %s1336_s28 }
 0x365   : > { %s1854_s28 = smov %s1340_s29  ;;  %s1855_s29 = smov %s1440_s14 }
 0x366   : > { %s1856_s30 = smov %s1429_s11  ;;  %22 = sbr.rel (!%p20_p11) target bundleno = 5 (0x5), region = 103 }
 0x36d   :  { %989 = vsyncpa [#allocation4], 1 }
 0x36e   :  { %991 = vsyncpa [#allocation4 + $0x1], 1 }
 0x36f   :  { %992 = vsyncpa [#allocation7], 1 }
 0x370   :  { %993 = vsyncpa [#allocation5], 1 }
 0x371   :  { %995 = vsyncpa [#allocation5 + $0x1], 1 }

</bundles_post_ra>
